<compile_context>
chip_gen: v7x
topology: tpu7x:2x2x1
jax: 0.10.0
libtpu: 0.0.40
codegen_flags: <defaults>
</compile_context>

<pallas_src>
import jax
import jax.numpy as jnp
from jax.experimental import pallas as pl
from jax.experimental.pallas import tpu as pltpu

INPUT_SIZE = 784
HIDDEN_SIZE = 64


def _round_up(n, m):
    return ((n + m - 1) // m) * m


def autoencoder_kernel(x_ref, w_enc_ref, b_enc_ref, w_dec_ref, b_dec_ref, o_ref):
    # Encoder: relu(x @ W_enc + b_enc) -> (tb, H); bf16 MXU matmul, f32 accumulation.
    x = x_ref[...].astype(jnp.bfloat16)                       # f32 load -> bf16 for MXU
    h = jnp.dot(x, w_enc_ref[...], preferred_element_type=jnp.float32)
    h = jnp.maximum(h + b_enc_ref[...], 0.0)                  # f32 bias + ReLU
    # Decoder: sigmoid(h @ W_dec + b_dec) -> (tb, 784); f32 accumulation.
    d = jnp.dot(h.astype(jnp.bfloat16), w_dec_ref[...],
                preferred_element_type=jnp.float32)
    d = d + b_dec_ref[...]
    # sigmoid(d) = 0.5 * tanh(0.5 * d) + 0.5 — a single EUP transcendental/element.
    out = 0.5 * jnp.tanh(0.5 * d) + 0.5
    # TODO(synk): on v6e/v7x the epilogue (bias + tanh + cast) could run in bf16 to
    # halve VPU/EUP work; kept f32 so the same kernel stays correct/fast on v5e.
    o_ref[...] = out.astype(o_ref.dtype)


def autoencoder_forward(x, w_enc, b_enc, w_dec, b_dec, *, tb=1024,
                        out_dtype=jnp.bfloat16):
    """Forward pass: sigmoid(relu(x @ w_enc + b_enc) @ w_dec + b_dec).

    x:     (B, 784)  float32 (or bf16) — read directly, no wrapper pad/cast pass.
    w_enc: (784, 64)  b_enc: (1, 64)    (already transposed to (in, out)).
    w_dec: (64, 784)  b_dec: (1, 784)
    Returns (B, 784) in `out_dtype` (bf16 default for bandwidth; pass jnp.float32
    for exact dtype parity with the PyTorch module).
    """
    B, D = x.shape
    H = w_enc.shape[1]

    # Weights/biases are tiny (~200 KiB total): one-time cast in the wrapper.
    w_enc_b = w_enc.astype(jnp.bfloat16)
    w_dec_b = w_dec.astype(jnp.bfloat16)
    b_enc_f = b_enc.astype(jnp.float32)
    b_dec_f = b_dec.astype(jnp.float32)

    # Batch tile: multiple of 8 sublanes (or the full batch when B <= 8).  Cap so
    # the grid gets >= 2 steps when the batch allows (megacore sharding).
    if B <= 8:
        tb_eff = B
    else:
        tb_eff = min(tb, _round_up(B, 8), max(8, _round_up(pl.cdiv(B, 2), 8)))
    grid = (pl.cdiv(B, tb_eff),)

    bytes_accessed = (
        x.size * x.dtype.itemsize
        + w_enc_b.size * 2 + w_dec_b.size * 2
        + b_enc_f.size * 4 + b_dec_f.size * 4
        + B * D * jnp.dtype(out_dtype).itemsize
    )
    cost = pl.CostEstimate(
        flops=4 * B * D * H,        # two matmuls, 2*B*D*H flops each
        transcendentals=B * D,      # one tanh per output element
        bytes_accessed=bytes_accessed,
    )

    return pl.pallas_call(
        autoencoder_kernel,
        out_shape=jax.ShapeDtypeStruct((B, D), out_dtype),
        grid_spec=pltpu.PrefetchScalarGridSpec(
            num_scalar_prefetch=0,
            grid=grid,
            in_specs=[
                pl.BlockSpec((tb_eff, D), lambda i: (i, 0)),   # x tile, full 784 lanes
                pl.BlockSpec((D, H), lambda i: (0, 0)),        # encoder weight (grid-invariant)
                pl.BlockSpec((1, H), lambda i: (0, 0)),        # encoder bias
                pl.BlockSpec((H, D), lambda i: (0, 0)),        # decoder weight (grid-invariant)
                pl.BlockSpec((1, D), lambda i: (0, 0)),        # decoder bias
            ],
            out_specs=pl.BlockSpec((tb_eff, D), lambda i: (i, 0)),
        ),
        compiler_params=pltpu.CompilerParams(
            dimension_semantics=("parallel",),       # batch tiles shard across TCs
            vmem_limit_bytes=48 * 1024 * 1024,       # room for tb>=1024 tiles on v5e/v6e
        ),
        cost_estimate=cost,
    )(x, w_enc_b, b_enc_f, w_dec_b, b_dec_f)


def init_params(key, input_size, hidden_size):
    """PyTorch nn.Linear-style uniform(-1/sqrt(fan_in), 1/sqrt(fan_in)) init."""
    k1, k2, k3, k4 = jax.random.split(key, 4)
    enc_bound = 1.0 / jnp.sqrt(jnp.float32(input_size))
    dec_bound = 1.0 / jnp.sqrt(jnp.float32(hidden_size))
    # Stored already transposed to (in, out) for the kernel.
    w_enc = jax.random.uniform(k1, (input_size, hidden_size), jnp.float32,
                               minval=-enc_bound, maxval=enc_bound)
    b_enc = jax.random.uniform(k2, (1, hidden_size), jnp.float32,
                               minval=-enc_bound, maxval=enc_bound)
    w_dec = jax.random.uniform(k3, (hidden_size, input_size), jnp.float32,
                               minval=-dec_bound, maxval=dec_bound)
    b_dec = jax.random.uniform(k4, (1, input_size), jnp.float32,
                               minval=-dec_bound, maxval=dec_bound)
    return w_enc, b_enc, w_dec, b_dec


if __name__ == "__main__":
    key = jax.random.PRNGKey(0)
    k_x, k_p = jax.random.split(key)

    B = 16  # small example batch; production use passes large B (tb up to 1024)
    x = jax.random.normal(k_x, (B, INPUT_SIZE), jnp.float32)
    w_enc, b_enc, w_dec, b_dec = init_params(k_p, INPUT_SIZE, HIDDEN_SIZE)

    out = autoencoder_forward(x, w_enc, b_enc, w_dec, b_dec)
    out = jax.block_until_ready(out)
    assert out.shape == (B, INPUT_SIZE)

    # Pure-JAX reference of the same bf16-matmul / f32-accumulate computation.
    xb = x.astype(jnp.bfloat16).astype(jnp.float32)
    web = w_enc.astype(jnp.bfloat16).astype(jnp.float32)
    wdb = w_dec.astype(jnp.bfloat16).astype(jnp.float32)
    h_ref = jnp.maximum(xb @ web + b_enc, 0.0)
    ref = jax.nn.sigmoid(h_ref.astype(jnp.bfloat16).astype(jnp.float32) @ wdb + b_dec)

    err = float(jnp.max(jnp.abs(out.astype(jnp.float32) - ref)))
    assert err < 2e-2, err

    print("KERNEL_OK")
</pallas_src>

<mosaic_0001>
module attributes {stable_mosaic.version = 11 : i64} {
  func.func @autoencoder_kernel(%arg0: i32, %arg1: memref<8x784xf32, #tpu.memory_space<vmem>>, %arg2: memref<784x64xbf16, #tpu.memory_space<vmem>>, %arg3: memref<1x64xf32, #tpu.memory_space<vmem>>, %arg4: memref<64x784xbf16, #tpu.memory_space<vmem>>, %arg5: memref<1x784xf32, #tpu.memory_space<vmem>>, %arg6: memref<8x784xbf16, #tpu.memory_space<vmem>>) attributes {dimension_semantics = [#tpu.dimension_semantics<parallel>], iteration_bounds = array<i64: 2>, scalar_prefetch = 0 : i64, scratch_operands = 0 : i64, tpu.core_type = #tpu.core_type<tc>, window_params = [{transform_indices = @transform_0, window_bounds = array<i64: 8, 784>}, {pipeline_mode = #tpu.pipeline_mode<synchronous>, transform_indices = @transform_1, window_bounds = array<i64: 784, 64>}, {pipeline_mode = #tpu.pipeline_mode<synchronous>, transform_indices = @transform_2, window_bounds = array<i64: 1, 64>}, {pipeline_mode = #tpu.pipeline_mode<synchronous>, transform_indices = @transform_3, window_bounds = array<i64: 64, 784>}, {pipeline_mode = #tpu.pipeline_mode<synchronous>, transform_indices = @transform_4, window_bounds = array<i64: 1, 784>}, {transform_indices = @transform_5, window_bounds = array<i64: 8, 784>}]} {
    %c0 = arith.constant 0 : index
    %c0_0 = arith.constant 0 : index
    %0 = vector.load %arg1[%c0, %c0_0] : memref<8x784xf32, #tpu.memory_space<vmem>>, vector<8x784xf32>
    %1 = arith.truncf %0 : vector<8x784xf32> to vector<8x784xbf16>
    %c0_1 = arith.constant 0 : index
    %c0_2 = arith.constant 0 : index
    %2 = vector.load %arg2[%c0_1, %c0_2] : memref<784x64xbf16, #tpu.memory_space<vmem>>, vector<784x64xbf16>
    %cst = arith.constant dense<0.000000e+00> : vector<8x64xf32>
    %3 = tpu.matmul %1, %2, %cst {dimension_numbers = #tpu.dot_dimension_numbers<[1], [0], [0], [1], [0, 0, 1, 1], [], []>} : vector<8x784xbf16>, vector<784x64xbf16>, vector<8x64xf32> -> vector<8x64xf32>
    %c0_3 = arith.constant 0 : index
    %c0_4 = arith.constant 0 : index
    %4 = vector.load %arg3[%c0_3, %c0_4] : memref<1x64xf32, #tpu.memory_space<vmem>>, vector<1x64xf32>
    %5 = vector.broadcast %4 : vector<1x64xf32> to vector<8x64xf32>
    %6 = arith.addf %3, %5 : vector<8x64xf32>
    %cst_5 = arith.constant 0.000000e+00 : f32
    %7 = vector.broadcast %cst_5 : f32 to vector<8x64xf32>
    %8 = arith.maximumf %6, %7 : vector<8x64xf32>
    %9 = arith.truncf %8 : vector<8x64xf32> to vector<8x64xbf16>
    %c0_6 = arith.constant 0 : index
    %c0_7 = arith.constant 0 : index
    %10 = vector.load %arg4[%c0_6, %c0_7] : memref<64x784xbf16, #tpu.memory_space<vmem>>, vector<64x784xbf16>
    %cst_8 = arith.constant dense<0.000000e+00> : vector<8x784xf32>
    %11 = tpu.matmul %9, %10, %cst_8 {dimension_numbers = #tpu.dot_dimension_numbers<[1], [0], [0], [1], [0, 0, 1, 1], [], []>} : vector<8x64xbf16>, vector<64x784xbf16>, vector<8x784xf32> -> vector<8x784xf32>
    %c0_9 = arith.constant 0 : index
    %c0_10 = arith.constant 0 : index
    %12 = vector.load %arg5[%c0_9, %c0_10] : memref<1x784xf32, #tpu.memory_space<vmem>>, vector<1x784xf32>
    %13 = vector.broadcast %12 : vector<1x784xf32> to vector<8x784xf32>
    %14 = arith.addf %11, %13 : vector<8x784xf32>
    %cst_11 = arith.constant 5.000000e-01 : f32
    %15 = vector.broadcast %cst_11 : f32 to vector<8x784xf32>
    %16 = arith.mulf %15, %14 : vector<8x784xf32>
    %17 = math.tanh %16 : vector<8x784xf32>
    %cst_12 = arith.constant 5.000000e-01 : f32
    %18 = vector.broadcast %cst_12 : f32 to vector<8x784xf32>
    %19 = arith.mulf %18, %17 : vector<8x784xf32>
    %cst_13 = arith.constant 5.000000e-01 : f32
    %20 = vector.broadcast %cst_13 : f32 to vector<8x784xf32>
    %21 = arith.addf %19, %20 : vector<8x784xf32>
    %22 = arith.truncf %21 : vector<8x784xf32> to vector<8x784xbf16>
    %c0_14 = arith.constant 0 : index
    %c0_15 = arith.constant 0 : index
    %23 = vector.load %arg6[%c0_14, %c0_15] : memref<8x784xbf16, #tpu.memory_space<vmem>>, vector<8x784xbf16>
    tpu.vector_store %arg6[%c0_14, %c0_15], %22 {strides = array<i32>} : memref<8x784xbf16, #tpu.memory_space<vmem>>, vector<8x784xbf16>,
    return
  }
  func.func @transform_0(%arg0: i32) -> (i32, i32) {
    %c0_i32 = arith.constant 0 : i32
    %c0_i32_0 = arith.constant 0 : i32
    return %arg0, %c0_i32 : i32, i32
  }
  func.func @transform_1(%arg0: i32) -> (i32, i32) {
    %c0_i32 = arith.constant 0 : i32
    %c0_i32_0 = arith.constant 0 : i32
    %c0_i32_1 = arith.constant 0 : i32
    return %c0_i32, %c0_i32_0 : i32, i32
  }
  func.func @transform_2(%arg0: i32) -> (i32, i32) {
    %c0_i32 = arith.constant 0 : i32
    %c0_i32_0 = arith.constant 0 : i32
    %c0_i32_1 = arith.constant 0 : i32
    return %c0_i32, %c0_i32_0 : i32, i32
  }
  func.func @transform_3(%arg0: i32) -> (i32, i32) {
    %c0_i32 = arith.constant 0 : i32
    %c0_i32_0 = arith.constant 0 : i32
    %c0_i32_1 = arith.constant 0 : i32
    return %c0_i32, %c0_i32_0 : i32, i32
  }
  func.func @transform_4(%arg0: i32) -> (i32, i32) {
    %c0_i32 = arith.constant 0 : i32
    %c0_i32_0 = arith.constant 0 : i32
    %c0_i32_1 = arith.constant 0 : i32
    return %c0_i32, %c0_i32_0 : i32, i32
  }
  func.func @transform_5(%arg0: i32) -> (i32, i32) {
    %c0_i32 = arith.constant 0 : i32
    %c0_i32_0 = arith.constant 0 : i32
    return %arg0, %c0_i32 : i32, i32
  }
}

</mosaic_0001>

<bundles_post_ra>
// kernel: tpu_custom_call.1
= control target key start
LH: loop header
LB: loop body
LE: loop exit
PB: predicated region body
PF: predicated region fallthrough
CT: control target
= control target key end

     0   :  { %10 = vsyncpa [#allocation3], 0  ;;  %s2127_s0 = inlined_call_operand.vmem [shape: f32[16,784], index: 0, kind: input, shape index: {}]   ;;  %s2128_s1 = inlined_call_operand.vmem [shape: bf16[784,64], index: 1, kind: input, shape index: {}]   ;;  %s2129_s2 = inlined_call_operand.vmem [shape: f32[1,64], index: 2, kind: input, shape index: {}]   ;;  %s2130_s3 = inlined_call_operand.vmem [shape: bf16[64,784], index: 3, kind: input, shape index: {}]   ;;  %s2131_s4 = inlined_call_operand.vmem [shape: f32[1,784], index: 4, kind: input, shape index: {}]   ;;  %s2132_s5 = inlined_call_operand.hbm [shape: bf16[16,784], index: 5, kind: output, shape index: {}]  }
   0x1   :  { %12 = vsyncpa [#allocation3 + $0x1], 0  ;;  %s1755_s18 = smov 0   ;;  %s1757_s19 = smov 0  }
   0x2   :  { %s1759_s20 = smov 0   ;;  %s1761_s21 = smov 0  }
   0x3 LB: > { %s1776_s22 = sadd.s32 4294967295, %s1719_s21   ;;  %s1319_s23 = sadd.s32 4294967294, %s1719_s21   ;;  %s1719_s21 = sphi %s1761_s21, %s2138_s21   ;;  %s1715_s20 = sphi %s1759_s20, %s2137_s20   ;;  %s1711_s19 = sphi %s1757_s19, %s2136_s19   ;;  %s1707_s18 = sphi %s1755_s18, %s2135_s18  }
   0x4   : > { %s1780_s24 = sadd.s32 1, %s1719_s21   ;;  %s135_s25 = sadd.s32 1, %s1715_s20 }
   0x5   : > { %s132_s26 = ssub.s32 %s1719_s21, %s1780_s24  ;;  %p145_p0 = scmp.ne.s32.totalorder %s1715_s20, %s1711_s19 }
   0x6   : > { %p133_p1 = scmp.eq.s32.totalorder %s132_s26, 0  ;;  %p146_p2 = scmp.eq.s32.totalorder %s1776_s22, 1 }
   0x7   : > { %p151_p3 = scmp.ne.s32.totalorder %s1711_s19, %s1707_s18  ;;  %p152_p4 = scmp.eq.s32.totalorder %s1319_s23, 1 }
   0x8   : > { %s1791_s27 = scalar_select %p133_p1, %s1715_s20, %s135_s25  }
   0x9   : > { %p1793_p5 = por %p146_p2, %p145_p0  ;;  %p1797_p6 = por %p152_p4, %p151_p3 }
   0xa   : > { %p1322_p7 = scmp.ge.s32.totalorder %s1719_s21, 1  ;;  %p190_p8 = scmp.lt.s32.totalorder %s1719_s21, 3 }
   0xc   : > { %p191_p9 = pnand %p1322_p7, %p190_p8 }
   0xd   : > { %v1554_v0 = vld [vmem:[%s2128_s1 + $0x40] sm:$0xff] (!%p191_p9)   ;;  %v1558_v4 = vld [vmem:[%s2128_s1 + $0x48] sm:$0xff] (!%p191_p9)   ;;  %v1562_v8 = vld [vmem:[%s2128_s1 + $0x50] sm:$0xff] (!%p191_p9)   ;;  %p218_p10 = scmp.lt.s32.totalorder (!%p191_p9), %s1776_s22, 1  ;;  %v1721_v44 = vmov (!%p191_p9), 0.0   ;;  %vm1722_vm0 = vmmov (!%p191_p9), 0  }
   0xe   : > { %194 = sbr.rel (%p191_p9) target bundleno = 580 (0x244), region = 40  ;;  %v1555_v1 = vld [vmem:[%s2128_s1] sm:$0xff] (!%p191_p9)   ;;  %1418 = vmatprep.subr.bf16.mxu0 (!%p191_p9), %v1554_v0  ;;  %v1559_v5 = vld [vmem:[%s2128_s1 + $0x8] sm:$0xff] (!%p191_p9)   ;;  %v1563_v9 = vld [vmem:[%s2128_s1 + $0x10] sm:$0xff] (!%p191_p9)   ;;  %vm637_vm1 = vcmask (!%p191_p9), 130048   ;;  %vm1016_vm2 = vcmask (!%p191_p9), 523264  }
   0xf   : > { %v1556_v2 = vld [vmem:[%s2128_s1 + $0xc0] sm:$0xff] (!%p191_p9)   ;;  %1419 = vmatpush3.bf16.msra.mxu0 (!%p191_p9), %v1555_v1  ;;  %v1560_v6 = vld [vmem:[%s2128_s1 + $0xc8] sm:$0xff] (!%p191_p9)   ;;  %v1564_v10 = vld [vmem:[%s2128_s1 + $0xd0] sm:$0xff] (!%p191_p9)   ;;  %s215_s10 = sand.u32 (!%p191_p9), 1, %s1711_s19   ;;  %s1511_s13 = smul.u32 (!%p191_p9), 448, %s1776_s22  ;;  %vm1243_vm3 = vcmask (!%p191_p9), 125952  }
  0x10   : > { %v1557_v3 = vld [vmem:[%s2128_s1 + $0x80] sm:$0xff] (!%p191_p9)   ;;  %1440 = vmatprep.subr.bf16.mxu1 (!%p191_p9), %v1556_v2  ;;  %1420 = vmatprep.subr.bf16.mxu0 (!%p191_p9), %v1558_v4  ;;  %v1561_v7 = vld [vmem:[%s2128_s1 + $0x88] sm:$0xff] (!%p191_p9)   ;;  %v1565_v11 = vld [vmem:[%s2128_s1 + $0x90] sm:$0xff] (!%p191_p9)   ;;  %s1509_s11 = smul.u32 (!%p191_p9), 28, %s215_s10  ;;  %s1246_s23 = scalar_lea.sflag (!%p191_p9), [#allocation3], %s215_s10 }
  0x11   : > { %1441 = vmatpush3.bf16.msra.mxu1 (!%p191_p9), %v1557_v3  ;;  %v1566_v12 = vld [vmem:[%s2128_s1 + $0x58] sm:$0xff] (!%p191_p9)   ;;  %v1570_v16 = vld [vmem:[%s2128_s1 + $0x60] sm:$0xff] (!%p191_p9)   ;;  %v1574_v20 = vld [vmem:[%s2128_s1 + $0x68] sm:$0xff] (!%p191_p9)  }
  0x12   : > { %1442 = vmatprep.subr.bf16.mxu1 (!%p191_p9), %v1560_v6  ;;  %v1567_v13 = vld [vmem:[%s2128_s1 + $0x18] sm:$0xff] (!%p191_p9)   ;;  %v1571_v17 = vld [vmem:[%s2128_s1 + $0x20] sm:$0xff] (!%p191_p9)   ;;  %v1575_v21 = vld [vmem:[%s2128_s1 + $0x28] sm:$0xff] (!%p191_p9)   ;;  %s217_s12 = scalar_lea.vmem (!%p191_p9), [#allocation2], %s1509_s11 }
  0x13   : > { %1421 = vmatpush3.bf16.msra.mxu0 (!%p191_p9), %v1559_v5  ;;  %v1568_v14 = vld [vmem:[%s2128_s1 + $0xd8] sm:$0xff] (!%p191_p9)   ;;  %v1572_v18 = vld [vmem:[%s2128_s1 + $0xe0] sm:$0xff] (!%p191_p9)   ;;  %v1576_v22 = vld [vmem:[%s2128_s1 + $0xe8] sm:$0xff] (!%p191_p9)   ;;  %s1260_s14 = sshll.u32 (!%p191_p9), %s217_s12, 4  ;;  %s2085_s14 = int_to_ptr.vmem [resolvable:$true] %s1260_s14 }
  0x14   : > { %1422 = vmatprep.subr.bf16.mxu0 (!%p191_p9), %v1562_v8  ;;  %v1569_v15 = vld [vmem:[%s2128_s1 + $0x98] sm:$0xff] (!%p191_p9)   ;;  %v1573_v19 = vld [vmem:[%s2128_s1 + $0xa0] sm:$0xff] (!%p191_p9)   ;;  %v1577_v23 = vld [vmem:[%s2128_s1 + $0xa8] sm:$0xff] (!%p191_p9)   ;;  %s1657_s26 = scalar_lea.vmem (!%p191_p9), %s2085_s14, 448 }
  0x15   : > { %1443 = vmatpush3.bf16.msra.mxu1 %v1561_v7  ;;  %s219_s15 = scalar_select %p218_p10, %s1776_s22, 1  ;;  %v1578_v24 = vld [vmem:[%s2128_s1 + $0x70] sm:$0xff]   ;;  %v1582_v28 = vld [vmem:[%s2128_s1 + $0x78] sm:$0xff]   ;;  %v1586_v36 = vld [vmem:[%s2128_s1 + $0x140] sm:$0xff]  }
  0x16   : > { %1444 = vmatprep.subr.bf16.mxu1 %v1564_v10  ;;  %v1579_v25 = vld [vmem:[%s2128_s1 + $0x30] sm:$0xff]   ;;  %v1583_v29 = vld [vmem:[%s2128_s1 + $0x38] sm:$0xff]   ;;  %v1587_v39 = vld [vmem:[%s2128_s1 + $0x100] sm:$0xff]   ;;  %p1658_p11 = scmp.ne.s32.totalorder %s2085_s14, %s1657_s26  ;;  %s1724_s22 = smov [#allocation2]  }
  0x17   : > { %1423 = vmatpush3.bf16.msra.mxu0 %v1563_v9  ;;  %s1510_s8 = smul.u32 56, %s219_s15  ;;  %v1580_v26 = vld [vmem:[%s2128_s1 + $0xf0] sm:$0xff]   ;;  %v1584_v30 = vld [vmem:[%s2128_s1 + $0xf8] sm:$0xff]   ;;  %v1588_v42 = vld [vmem:[%s2128_s1 + $0x148] sm:$0xff]   ;;  %s2083_s15 = scalar_lea.hbm %s2132_s5, %s1511_s13 }
  0x18   : > { %1424 = vmatprep.subr.bf16.mxu0 %v1566_v12  ;;  %v1581_v27 = vld [vmem:[%s2128_s1 + $0xb0] sm:$0xff]   ;;  %v1585_v33 = vld [vmem:[%s2128_s1 + $0xb8] sm:$0xff]   ;;  %v1589_v43 = vld [vmem:[%s2128_s1 + $0x108] sm:$0xff]   ;;  %p1659_p12 = pnand %p1658_p11, %p1793_p5  ;;  %s1661_s30 = sshll.u32 %s1724_s22, 4  ;;  %s1662_s30 = int_to_ptr.vmem [resolvable:$false] %s1661_s30 }
  0x19   : > { %1445 = vmatpush3.bf16.msra.mxu1 %v1565_v11  ;;  %s1895_s25 = scalar_lea.vmem %s2127_s0, %s1510_s8  ;;  %v1590_v45 = vld [vmem:[%s2128_s1 + $0x150] sm:$0xff]   ;;  %v1592_v47 = vld [vmem:[%s2128_s1 + $0x158] sm:$0xff]   ;;  %v1594_v49 = vld [vmem:[%s2128_s1 + $0x160] sm:$0xff]   ;;  %s1663_s6 = scalar_lea.vmem %s1662_s30, 896 }
  0x1a   : > { %1446 = vmatprep.subr.bf16.mxu1 %v1568_v14  ;;  %v225_v31 = vld [vmem:[%s1895_s25 + $0x8] sm:$0xff]  ;;  %v224_v34 = vld [vmem:[%s1895_s25] sm:$0xff]  ;;  %v227_v37 = vld [vmem:[%s1895_s25 + $0x18] sm:$0xff]  ;;  %p1660_p13 = pneg %p1659_p12  ;;  %p1664_p0 = scmp.lt.s32.totalorder %s2085_s14, %s1662_s30 }
  0x1b   : > { %1425 = vmatpush3.bf16.msra.mxu0 %v1567_v13  ;;  %v232_v32 = vpack.c.bf16 %v225_v31, %v225_v31  ;;  %v231_v35 = vpack.c.bf16 %v224_v34, %v224_v34  ;;  %v234_v38 = vpack.c.bf16 %v227_v37, %v227_v37  ;;  %v226_v40 = vld [vmem:[%s1895_s25 + $0x10] sm:$0xff]  ;;  %v1593_v48 = vld [vmem:[%s2128_s1 + $0x118] sm:$0xff]   ;;  %v1595_v50 = vld [vmem:[%s2128_s1 + $0x120] sm:$0xff]   ;;  %p1665_p1 = scmp.lt.s32.totalorder %s1663_s6, %s1657_s26 }
  0x1c   : > { %1426 = vmatprep.subr.bf16.mxu0 %v1570_v16  ;;  %v233_v41 = vpack.c.bf16 %v226_v40, %v226_v40  ;;  %v1591_v46 = vld [vmem:[%s2128_s1 + $0x110] sm:$0xff]   ;;  %v1596_v51 = vld [vmem:[%s2128_s1 + $0x168] sm:$0xff]   ;;  %v1602_v53 = vld [vmem:[%s2128_s1 + $0x180] sm:$0xff]  }
  0x1d   : > { %1447 = vmatpush3.bf16.msra.mxu1 %v1569_v15  ;;  %673 = vmatprep.mubr.bf16.mxu0 %v232_v32  ;;  %v1597_v52 = vld [vmem:[%s2128_s1 + $0x128] sm:$0xff]   ;;  %v1598_v55 = vld [vmem:[%s2128_s1 + $0x170] sm:$0xff]   ;;  %v1600_v60 = vld [vmem:[%s2128_s1 + $0x178] sm:$0xff]   ;;  %p1666_p2 = por %p1665_p1, %p1664_p0 }
  0x1e   : > { %1448 = vmatprep.subr.bf16.mxu1 %v1572_v18  ;;  %713 = vmatprep.mubr.bf16.mxu1 %v234_v38  ;;  %v229_v54 = vld [vmem:[%s1895_s25 + $0x28] sm:$0xff]  ;;  %v230_v57 = vld [vmem:[%s1895_s25 + $0x30] sm:$0xff]  ;;  %v1601_v61 = vld [vmem:[%s2128_s1 + $0x138] sm:$0xff]  }
  0x1f   : > { %1427 = vmatpush3.bf16.msra.mxu0 %v1571_v17  ;;  %v236_v56 = vpack.c.bf16 %v229_v54, %v229_v54  ;;  %v237_v58 = vpack.c.bf16 %v230_v57, %v230_v57  ;;  %v1599_v59 = vld [vmem:[%s2128_s1 + $0x130] sm:$0xff]   ;;  %v228_v62 = vld [vmem:[%s1895_s25 + $0x20] sm:$0xff]  ;;  %v1611_v4 = vld [vmem:[%s2130_s3 + $0x3c] ss:$28 sps:$4 sm:$0xff]   ;;  %v1723_v17 = vmov 0   ;;  %p1667_p3 = pnand %p1666_p2, %p1660_p13 }
  0x20   : > { %1428 = vmatprep.subr.bf16.mxu0 %v1574_v20  ;;  %v235_v63 = vpack.c.bf16 %v228_v62, %v228_v62  ;;  %v1603_v0 = vld [vmem:[%s2130_s3] ss:$28 sps:$4 sm:$0xff]   ;;  %v1606_v2 = vld [vmem:[%s2130_s3 + $0x10] ss:$28 sps:$4 sm:$0xff]   ;;  %v1609_v5 = vld [vmem:[%s2130_s3 + $0x38] ss:$28 sps:$4 sm:$0xff]  }
  0x21   : > { %1449 = vmatpush3.bf16.msra.mxu1 %v1573_v19  ;;  %v1605_v1 = vld [vmem:[%s2130_s3 + $0x4] ss:$28 sps:$4 sm:$0xff]   ;;  %v1608_v3 = vld [vmem:[%s2130_s3 + $0x14] ss:$28 sps:$4 sm:$0xff]   ;;  %v1614_v6 = vld [vmem:[%s2130_s3 + $0x4c] ss:$28 sps:$4 sm:$0xff]  }
  0x22   : > { %1450 = vmatprep.subr.bf16.mxu1 %v1576_v22  ;;  %v1612_v7 = vld [vmem:[%s2130_s3 + $0x48] ss:$28 sps:$4 sm:$0xff]   ;;  %v1617_v8 = vld [vmem:[%s2130_s3 + $0x74] ss:$28 sps:$4 sm:$0xff]   ;;  %v1618_v11 = vld [vmem:[%s2130_s3 + $0x80] ss:$28 sps:$4 sm:$0xff]  }
  0x23   : > { %1429 = vmatpush3.bf16.msra.mxu0 %v1575_v21  ;;  %v1615_v9 = vld [vmem:[%s2130_s3 + $0x70] ss:$28 sps:$4 sm:$0xff]   ;;  %v1620_v10 = vld [vmem:[%s2130_s3 + $0x84] ss:$28 sps:$4 sm:$0xff]   ;;  %v1626_v14 = vld [vmem:[%s2130_s3 + $0xbc] ss:$28 sps:$4 sm:$0xff]  }
  0x24   : > { %1430 = vmatprep.subr.bf16.mxu0 %v1578_v24  ;;  %v1623_v12 = vld [vmem:[%s2130_s3 + $0xac] ss:$28 sps:$4 sm:$0xff]   ;;  %v1624_v15 = vld [vmem:[%s2130_s3 + $0xb8] ss:$28 sps:$4 sm:$0xff]   ;;  %v1324_v19 = vld [vmem:[%s2129_s2] ss:$0 sm:$0xff] }
  0x25   : > { %1451 = vmatpush3.bf16.msra.mxu1 %v1577_v23  ;;  %v1621_v13 = vld [vmem:[%s2130_s3 + $0xa8] ss:$28 sps:$4 sm:$0xff]  }
  0x26   : > { %1452 = vmatprep.subr.bf16.mxu1 %v1580_v26  ;;  %v1629_v16 = vld [vmem:[%s2130_s3 + $0xc] ss:$28 sps:$4 sm:$0xff]  }
  0x27   : > { %1431 = vmatpush3.bf16.msra.mxu0 %v1579_v25  ;;  %v1641_v54 = vld [vmem:[%s2130_s3 + $0x88] ss:$28 sps:$4 sm:$0xff]  }
  0x28   : > { %1432 = vmatprep.subr.bf16.mxu0 %v1582_v28 }
  0x29   : > { %1453 = vmatpush3.bf16.msra.mxu1 %v1581_v27 }
  0x2a   : > { %1454 = vmatprep.subr.bf16.mxu1 %v1584_v30 }
  0x2b   : > { %1433 = vmatpush3.bf16.msra.mxu0 %v1583_v29 }
  0x2c   : > { %1462 = vmatprep.subr.bf16.mxu0 %v1586_v36 }
  0x2d   : > { %1455 = vmatpush3.bf16.msra.mxu1 %v1585_v33 }
  0x2e   : > { %674 = vmatmul.mubr.bf16.vlgmr.msra.gmra.mrb[0].mxu0 %v231_v35  ;;  %1491 = vmatprep.subr.bf16.mxu1 %v1721_v44 }
  0x2f   : > { %1463 = vmatpush3.bf16.msra.mxu0 %v1587_v39  ;;  %753 = vmatprep.mubr.bf16.mxu0 %v236_v56  ;;  %v837_v56 = vlaneseq }
  0x30   : > { %714 = vmatmul.mubr.bf16.vlgmr.msra.gmra.mrb[0].mxu1 %v233_v41  ;;  %1464 = vmatprep.subr.bf16.mxu0 %v1588_v42 }
  0x31   : > { %1493 = vmatprep.mubr.msk.bf16.mxu1 %vm1722_vm0, %v1721_v44  ;;  %1492 = vmatpush3.bf16.msra.mxu1 %v1602_v53  ;;  %v1640_v53 = vld [vmem:[%s2130_s3 + $0x50] ss:$28 sps:$4 sm:$0xff]   ;;  %v2064_v57 = vshrl.u32 %v837_v56, 7 }
  0x32   : > { %1020 = vmatprep.subr.bf16.mxu1 %v1605_v1 }
  0x33   : > { %1465 = vmatpush3.bf16.msra.mxu0 %v1589_v43  ;;  %v1627_v43 = vld [vmem:[%s2130_s3 + $0x8] ss:$28 sps:$4 sm:$0xff]   ;;  %v859_v62 = vsub.s32 5, %v2064_v57 }
  0x34   : > { %1466 = vmatprep.subr.bf16.mxu0 %v1590_v45 }
  0x37   : > { %1467 = vmatpush3.bf16.msra.mxu0 %v1591_v46  ;;  %v1632_v46 = vld [vmem:[%s2130_s3 + $0x44] ss:$28 sps:$4 sm:$0xff]  }
  0x38   : > { %1468 = vmatprep.subr.bf16.mxu0 %v1592_v47  ;;  %1494 = vmatmul.mubr.msk.bf16.vlgmr.msra.gmra.mrb[4].mxu1 %vm637_vm1, %v237_v58  ;;  %v1630_v47 = vld [vmem:[%s2130_s3 + $0x40] ss:$28 sps:$4 sm:$0xff]   ;;  %v839_v58 = vsub.s32 0, %v2064_v57 }
  0x39   : > { %1021 = vmatpush1.bf16.msra.mxu1 %v1603_v0  ;;  %1052 = vmatprep.mubr.bf16.mxu1 %v1723_v17 }
  0x3a   : > { %1022 = vmatprep.subr.bf16.mxu1 %v1611_v4 }
  0x3b   : > { %1469 = vmatpush3.bf16.msra.mxu0 %v1593_v48  ;;  %v1635_v48 = vld [vmem:[%s2130_s3 + $0x7c] ss:$28 sps:$4 sm:$0xff]  }
  0x3c   : > { %1470 = vmatprep.subr.bf16.mxu0 %v1594_v49  ;;  %v1633_v49 = vld [vmem:[%s2130_s3 + $0x78] ss:$28 sps:$4 sm:$0xff]  }
  0x3d   : > { %1023 = vmatpush1.bf16.msra.mxu1 %v1609_v5 }
  0x3e   : > { %1024 = vmatprep.subr.bf16.mxu1 %v1617_v8 }
  0x3f   : > { %1471 = vmatpush3.bf16.msra.mxu0 %v1595_v50  ;;  %v1638_v50 = vld [vmem:[%s2130_s3 + $0xb4] ss:$28 sps:$4 sm:$0xff]  }
  0x40   : > { %1472 = vmatprep.subr.bf16.mxu0 %v1596_v51  ;;  %v1636_v51 = vld [vmem:[%s2130_s3 + $0xb0] ss:$28 sps:$4 sm:$0xff]  }
  0x41   : > { %1025 = vmatpush1.bf16.msra.mxu1 %v1615_v9 }
  0x42   : > { %1026 = vmatprep.subr.bf16.mxu1 %v1623_v12 }
  0x43   : > { %1473 = vmatpush3.bf16.msra.mxu0 %v1597_v52  ;;  %v1639_v52 = vld [vmem:[%s2130_s3 + $0x18] ss:$28 sps:$4 sm:$0xff]  }
  0x44   : > { %1474 = vmatprep.subr.bf16.mxu0 %v1598_v55  ;;  %v1642_v55 = vld [vmem:[%s2130_s3 + $0xc0] ss:$28 sps:$4 sm:$0xff]  }
  0x45   : > { %1027 = vmatpush1.bf16.msra.mxu1 %v1621_v13 }
  0x46   : > { %1061 = vmatprep.subr.bf16.mxu1 %v1629_v16 }
  0x47   : > { %1475 = vmatpush3.bf16.msra.mxu0 %v1599_v59  ;;  %v855_v59 = vsub.s32 4, %v2064_v57 }
  0x48   : > { %1476 = vmatprep.subr.bf16.mxu0 %v1600_v60  ;;  %v835_v60 = vld [vmem:[%s2131_s4] sm:$0x7f] }
  0x49   : > { %v860_v1 = vrot.slane %v835_v60, %v859_v62 }
  0x4b   : > { %1477 = vmatpush3.bf16.msra.mxu0 %v1601_v61  ;;  %v843_v61 = vsub.s32 1, %v2064_v57 }
  0x4c   : > { %1102 = vmatprep.subr.bf16.mxu0 %v1608_v3 }
  0x4d   : > { %v844_v0 = vrot.slane %v835_v60, %v843_v61 }
  0x4e   : > { %754 = vmatmul.mubr.bf16.vlgmr.msra.gmra.mrb[4].mxu0 %v235_v63  ;;  %v840_v63 = vrot.slane %v835_v60, %v839_v58 }
  0x4f   : > { %1103 = vmatpush1.bf16.msra.mxu0 %v1606_v2  ;;  %1134 = vmatprep.mubr.bf16.mxu0 %v1723_v17 }
  0x50   : > { %1104 = vmatprep.subr.bf16.mxu0 %v1614_v6 }
  0x53   : > { %1105 = vmatpush1.bf16.msra.mxu0 %v1612_v7 }
  0x54   : > { %1106 = vmatprep.subr.bf16.mxu0 %v1620_v10 }
  0x57   : > { %1107 = vmatpush1.bf16.msra.mxu0 %v1618_v11 }
  0x58   : > { %1108 = vmatprep.subr.bf16.mxu0 %v1626_v14 }
  0x5b   : > { %1109 = vmatpush1.bf16.msra.mxu0 %v1624_v15 }
 0x101   : > { %v1434_v18 = vpop.f32.mrb[0].mxu0 }
 0x102   : > { %v1435_v20 = vpop.f32.mrb[1].mxu0 }
 0x103   : > { %v1436_v21 = vadd.f32 %v1435_v20, %v1434_v18  ;;  %v1437_v22 = vpop.f32.mrb[2].mxu0  ;;  %v1456_v23 = vpop.f32.mrb[0].mxu1  ;;  %v847_v18 = vsub.s32 2, %v2064_v57 }
 0x104   : > { %v1438_v24 = vpop.f32.mrb[3].mxu0  ;;  %v1457_v26 = vpop.f32.mrb[1].mxu1 }
 0x105   : > { %v676_v25 = vadd.f32 %v1436_v21, %v1324_v19  ;;  %v1458_v27 = vadd.f32 %v1457_v26, %v1456_v23  ;;  %v1459_v28 = vpop.f32.mrb[2].mxu1  ;;  %v851_v19 = vsub.s32 3, %v2064_v57  ;;  %v848_v20 = vrot.slane %v835_v60, %v847_v18 }
 0x106   : > { %v1460_v29 = vpop.f32.mrb[3].mxu1 }
 0x107   : > { %v716_v30 = vadd.f32 %v1458_v27, %v676_v25  ;;  %v852_v21 = vrot.slane %v835_v60, %v851_v19 }
 0x10b   : > { %v795_v31 = vpop.f32.mrb[4].mxu1 }
 0x10c   : > { %v1495_v32 = vpop.f32.mrb[5].mxu1 }
 0x10d   : > { %v798_v33 = vpop.f32.mrb[6].mxu1 }
 0x10e   : > { %v1496_v34 = vpop.f32.mrb[7].mxu1 }
 0x121   : > { %v1478_v35 = vpop.f32.mrb[4].mxu0 }
 0x122   : > { %v1479_v36 = vpop.f32.mrb[5].mxu0 }
 0x123   : > { %v1480_v37 = vadd.f32 %v1479_v36, %v1478_v35  ;;  %v1481_v38 = vpop.f32.mrb[6].mxu0 }
 0x124   : > { %v1482_v39 = vpop.f32.mrb[7].mxu0 }
 0x125   : > { %v756_v40 = vadd.f32 %v1480_v37, %v716_v30 }
 0x127   : > { %v796_v41 = vadd.f32 %v795_v31, %v756_v40 }
 0x129   : > { %v801_v42 = vmax.f32 %v796_v41, 0.0 }
 0x12b   : > { %v802_v45 = vpack.c.bf16 %v801_v42, %v801_v42 }
 0x12d   : > { %1403 = vmatmul.mubr.msk.bf16.vlgmr.msra.gmra.mrb[8].mxu1 %vm1016_vm2, %v802_v45  ;;  %1405 = vmatmul.mubr.msk.bf16.vlgmr.msra.gmra.mrb[8].mxu0 %vm1016_vm2, %v802_v45 }
 0x12e   : > { %1062 = vmatpush1.bf16.msra.mxu1 %v1627_v43  ;;  %1093 = vmatprep.mubr.bf16.mxu1 %v1723_v17 }
 0x12f   : > { %1063 = vmatprep.subr.bf16.mxu1 %v1632_v46 }
 0x132   : > { %1064 = vmatpush1.bf16.msra.mxu1 %v1630_v47 }
 0x133   : > { %1065 = vmatprep.subr.bf16.mxu1 %v1635_v48 }
 0x136   : > { %1066 = vmatpush1.bf16.msra.mxu1 %v1633_v49 }
 0x137   : > { %1067 = vmatprep.subr.bf16.mxu1 %v1638_v50 }
 0x13a   : > { %1068 = vmatpush1.bf16.msra.mxu1 %v1636_v51 }
 0x13b   : > { %1497 = vmatprep.subr.bf16.mxu1 %v1721_v44 }
 0x13d   : > { %1404 = vmatmul.mubr.msk.bf16.vlgmr.msra.gmra.mrb[12].mxu1 %vm1016_vm2, %v802_v45 }
 0x13e   : > { %1498 = vmatpush3.bf16.msra.mxu1 %v1639_v52  ;;  %1505 = vmatprep.mubr.msk.bf16.mxu1 %vm1722_vm0, %v1721_v44 }
 0x13f   : > { %1499 = vmatprep.subr.bf16.mxu1 %v1721_v44 }
 0x142   : > { %1500 = vmatpush3.bf16.msra.mxu1 %v1640_v53 }
 0x143   : > { %1501 = vmatprep.subr.bf16.mxu1 %v1721_v44 }
 0x146   : > { %1502 = vmatpush3.bf16.msra.mxu1 %v1641_v54 }
 0x147   : > { %1503 = vmatprep.subr.bf16.mxu1 %v1721_v44  ;;  %v856_v44 = vrot.slane %v835_v60, %v855_v59 }
 0x14a   : > { %1504 = vmatpush3.bf16.msra.mxu1 %v1642_v55 }
 0x14d   : > { %1506 = vmatmul.mubr.msk.bf16.vlgmr.msra.gmra.mrb[16].mxu1 %vm1016_vm2, %v802_v45  ;;  %v863_v45 = vsub.s32 6, %v2064_v57 }
 0x14f   : > { %v864_v46 = vrot.slane %v835_v60, %v863_v45 }
 0x200   : > { %v1054_v2 = vpop.f32.mrb[8].mxu1  ;;  %v1136_v3 = vpop.f32.mrb[8].mxu0 }
 0x201   : > { %v1055_v4 = vadd.f32 %v1054_v2, %v840_v63  ;;  %v1137_v5 = vadd.f32 %v1136_v3, %v856_v44  ;;  %v1056_v6 = vpop.f32.mrb[9].mxu1  ;;  %v1138_v7 = vpop.f32.mrb[9].mxu0 }
 0x202   : > { %v1057_v8 = vadd.f32 %v1056_v6, %v844_v0  ;;  %v1139_v9 = vadd.f32 %v1138_v7, %v860_v1  ;;  %v1058_v10 = vpop.f32.mrb[10].mxu1  ;;  %v1140_v11 = vpop.f32.mrb[10].mxu0 }
 0x203   : > { %v1183_v12 = vmul.f32 0.5, %v1055_v4  ;;  %v1187_v13 = vmul.f32 0.5, %v1137_v5  ;;  %v1059_v14 = vpop.f32.mrb[11].mxu1  ;;  %v1141_v15 = vpop.f32.mrb[11].mxu0 }
 0x204   : > { %v1184_v16 = vmul.f32 0.5, %v1057_v8  ;;  %v1188_v17 = vmul.f32 0.5, %v1139_v9 }
 0x205   : > { %1643 = vtanh.f32 %v1183_v12 }
 0x206   : > { %1645 = vtanh.f32 %v1187_v13 }
 0x207   : > { %1647 = vtanh.f32 %v1184_v16 }
 0x208   : > { %1649 = vtanh.f32 %v1188_v17 }
 0x20f   : > { %v1644_v22 = vpop.eup %1643 }
 0x210   : > { %v1646_v23 = vpop.eup %1645  ;;  %v1197_v24 = vmul.f32 0.5, %v1644_v22  ;;  %v1095_v25 = vpop.f32.mrb[12].mxu1 }
 0x211   : > { %v1648_v26 = vpop.eup %1647  ;;  %v1201_v27 = vmul.f32 0.5, %v1646_v23  ;;  %v1096_v28 = vadd.f32 %v1095_v25, %v848_v20  ;;  %v1097_v29 = vpop.f32.mrb[13].mxu1 }
 0x212   : > { %v1650_v30 = vpop.eup %1649  ;;  %v1204_v31 = vadd.f32 0.5, %v1197_v24  ;;  %v1198_v32 = vmul.f32 0.5, %v1648_v26  ;;  %v1098_v33 = vadd.f32 %v1097_v29, %v852_v21  ;;  %v1099_v34 = vpop.f32.mrb[14].mxu1 }
 0x213   : > { %v1208_v35 = vadd.f32 0.5, %v1201_v27  ;;  %v1202_v36 = vmul.f32 0.5, %v1650_v30  ;;  %v1185_v37 = vmul.f32 0.5, %v1096_v28  ;;  %v1100_v38 = vpop.f32.mrb[15].mxu1 }
 0x214   : > { %v1205_v39 = vadd.f32 0.5, %v1198_v32  ;;  %v1186_v40 = vmul.f32 0.5, %v1098_v33 }
 0x215   : > { %v1209_v41 = vadd.f32 0.5, %v1202_v36  ;;  %1651 = vtanh.f32 %v1185_v37 }
 0x216   : > { %v1414_v42 = vpack.c.bf16 %v1205_v39, %v1204_v31  ;;  %1653 = vtanh.f32 %v1186_v40 }
 0x217   : > { %v1416_v43 = vpack.c.bf16 %v1209_v41, %v1208_v35 }
 0x218   : > { %1240 = vst [vmem:[%s217_s12] sm:$0xff] %v1414_v42 }
 0x219   : > { %1242 = vst [vmem:[%s217_s12 + $0x10] sm:$0xff] %v1416_v43 }
 0x21f   : > { %v1652_v47 = vpop.eup %1651 }
 0x220   : > { %v1654_v48 = vpop.eup %1653  ;;  %v1199_v49 = vmul.f32 0.5, %v1652_v47  ;;  %v1177_v50 = vpop.f32.mrb[16].mxu1 }
 0x221   : > { %v1200_v51 = vmul.f32 0.5, %v1654_v48  ;;  %v1178_v52 = vadd.f32 %v1177_v50, %v864_v46  ;;  %v1507_v53 = vpop.f32.mrb[17].mxu1 }
 0x222   : > { %v1206_v54 = vadd.f32 0.5, %v1199_v49  ;;  %v1180_v55 = vpop.f32.mrb[18].mxu1 }
 0x223   : > { %v1207_v56 = vadd.f32 0.5, %v1200_v51  ;;  %v1189_v58 = vmul.f32 0.5, %v1178_v52  ;;  %v1508_v59 = vpop.f32.mrb[19].mxu1 }
 0x225   : > { %v1415_v61 = vpack.c.bf16 %v1207_v56, %v1206_v54  ;;  %1655 = vtanh.f32 %v1189_v58 }
 0x227   : > { %1241 = vst [vmem:[%s217_s12 + $0x8] sm:$0xff] %v1415_v61 }
 0x22f   : > { %v1656_v57 = vpop.eup %1655 }
 0x230   : > { %v1203_v60 = vmul.f32 0.5, %v1656_v57 }
 0x232   : > { %v1210_v62 = vadd.f32 0.5, %v1203_v60 }
 0x234   : > { %v1417_v63 = vpack.c.bf16 %v1210_v62, %v1210_v62 }
 0x236   : > { %1244 = vst.msk [vmem:[%s217_s12 + $0x18] sm:$0xf] %vm1243_vm3, %v1417_v63 }
 0x237   : > { %1670 = shalt.err (!%p1667_p3)
}
 0x238   : > { %s1671_s25 = scalar_lea.hbm %s2083_s15, 448  ;;  %s1675_s9 = scalar_lea.hbm %s2132_s5, 896 }
 0x239   : > { %p1672_p4 = scmp.ne.s32.totalorder %s2083_s15, %s1671_s25  ;;  %p1676_p9 = scmp.lt.u32.totalorder %s2083_s15, %s2132_s5 }
 0x23a   : > { %p1677_p10 = scmp.lt.u32.totalorder %s1675_s9, %s1671_s25  ;;  %p1679_p12 = scmp.lt.u32.totalorder %s1671_s25, %s2083_s15 }
 0x23b   : > { %p1673_p7 = pnand %p1672_p4, %p1793_p5 }
 0x23c   : > { %p1678_p11 = por %p1677_p10, %p1676_p9 }
 0x23d   : > { %p1674_p8 = pneg %p1673_p7 }
 0x23e   : > { %p1680_p13 = por %p1679_p12, %p1678_p11 }
 0x240   : > { %p1681_p0 = pnand %p1680_p13, %p1674_p8 }
 0x242   : > { %1684 = shalt.err (!%p1681_p0)
}
 0x243   : > { %1512 = dma.vmem_to_hbm [thread:$0]  (%p1793_p5), %s2085_s14, 448, %s2083_s15, %s1246_s23  }
 0x244 PF: > { %p1518_p1 = scmp.ge.s32.totalorder %s1719_s21, 2  ;;  %s1272_s12 = sand.u32 1, %s1707_s18  }
 0x245   : > { %s1273_s13 = scalar_lea.sflag [#allocation3], %s1272_s12 }
 0x246   : > { %p1515_p2 = pnand %p1518_p1, %p1797_p6 }
 0x248   : > { %1702 = dma.done.wait (!%p1515_p2), %s1273_s13, 448  }
 0x249   : > { %1704 = vsyncadd (!%p1515_p2), %s1273_s13, 4294966848  ;;  %p15_p3 = scmp.ge.s32.totalorder %s1780_s24, 4   ;;  %s2135_s18 = smov %s1711_s19 }
 0x24a   : > { %s2136_s19 = smov %s1715_s20  ;;  %s2137_s20 = smov %s1791_s27 }
 0x24b   : > { %s2138_s21 = smov %s1780_s24  ;;  %17 = sbr.rel (!%p15_p3) target bundleno = 3 (0x3), region = 75 }
 0x252   :  { %1278 = vsyncpa [#allocation3], 1 }
 0x253   :  { %1280 = vsyncpa [#allocation3 + $0x1], 1 }

</bundles_post_ra>
